<compile_context>
chip_gen: v5e
topology: v5e:2x2
jax: 0.10.0
libtpu: 0.0.40
codegen_flags: <defaults>
</compile_context>

<pallas_src>
import functools

import jax
import jax.numpy as jnp
from jax.experimental import pallas as pl
from jax.experimental.pallas import tpu as pltpu


# ---------------------------------------------------------------------------
# helpers
# ---------------------------------------------------------------------------
def _softmax_lastdim(x):
    m = jnp.max(x, axis=-1, keepdims=True)
    ex = jnp.exp(x - m)
    return ex / jnp.sum(ex, axis=-1, keepdims=True)


def _expand_attn(attn):
    """(F, H) per-head attention vectors -> (H*F, H) block-diagonal matrix so
    fs(N, H*F) @ result gives all heads' attention logits in one matmul."""
    f, h = attn.shape
    flat = attn.T.reshape(h * f, 1)                       # row h*F+fi = attn[fi, h]
    mask = (jnp.arange(h * f)[:, None] // f) == jnp.arange(h)[None, :]
    return flat * mask.astype(attn.dtype)


def _dense_gat(adj, h, w, al_bd, ar_bd, bias, *, n_dst, heads, out_feats,
               neg_slope, apply_elu):
    """Dense-adjacency multi-head GATConv on VMEM-resident values.

    adj: (N_dst, N_src) 0/1 mask in bf16 (compared, never cast to f32).
    """
    hf = heads * out_feats
    fs = jnp.dot(h, w, preferred_element_type=jnp.float32)                  # (N_src, H*F)
    el = jnp.dot(fs, al_bd, preferred_element_type=jnp.float32)             # (N_src, H)
    er = jnp.dot(fs[:n_dst], ar_bd, preferred_element_type=jnp.float32)     # (N_dst, H)
    elT = el.T                          # single XLU relayout, hoisted out of the head loop
    edge = adj > 0                      # bool mask; no f32 adjacency copy

    def head_alpha(hd):
        e = er[:, hd:hd + 1] + elT[hd:hd + 1, :]                            # (N_dst, N_src)
        e = jnp.where(e > 0, e, neg_slope * e)                              # LeakyReLU
        e = jnp.where(edge, e, -1e30)                                       # mask non-edges
        e = e - jnp.max(e, axis=-1, keepdims=True)
        p = jnp.where(edge, jnp.exp(e), 0.0)
        return p / jnp.maximum(jnp.sum(p, axis=-1, keepdims=True), 1e-30)

    if hf <= 128:
        # masked matmul drops each head's result into its lane range of one
        # lane-dense slab; the redundant columns hide in lane padding here.
        col = jax.lax.broadcasted_iota(jnp.int32, (1, hf), 1)
        out = jnp.zeros((n_dst, hf), jnp.float32)
        for hd in range(heads):                                             # static unroll (tiny H)
            head_mask = jnp.logical_and(col >= hd * out_feats,
                                        col < (hd + 1) * out_feats).astype(jnp.float32)
            out = out + jnp.dot(head_alpha(hd), fs * head_mask,
                                preferred_element_type=jnp.float32)
    else:
        # wide heads: per-head static slice (no H-times redundant MXU work)
        pieces = [jnp.dot(head_alpha(hd),
                          fs[:, hd * out_feats:(hd + 1) * out_feats],
                          preferred_element_type=jnp.float32)
                  for hd in range(heads)]
        out = jnp.concatenate(pieces, axis=-1)

    out = out + bias
    if apply_elu:
        out = jnp.where(out > 0, out, jnp.exp(out) - 1.0)                   # ELU
    return out


# ---------------------------------------------------------------------------
# fused kernel: hierarchical aggregation (grid over user batches)
#               + InstanceNorm1d + GATConv#1 (ELU) + GATConv#2 + head-mean
#               (finalize on the last grid step; features stay in VMEM)
# ---------------------------------------------------------------------------
def hgat_kernel(counts_ref, wt_ref, w1_ref, b1_ref, w2_ref, b2_ref,
                g_ref, bt_ref,
                adj0_ref, gw1_ref, al1_ref, ar1_ref, gb1_ref,
                adj1_ref, gw2_ref, al2_ref, ar2_ref, gb2_ref,
                o_ref, x_scr, *,
                tu, n_users, n_items, n_words,
                n_dst0, n_dst1, heads1, f1, heads2, f2, neg_slope):
    step = pl.program_id(0)

    # ---- stage 1: word -> item -> user aggregation, TU users per step ------
    # Both attention softmaxes in the torch module act on singleton axes
    # (identically 1.0), so the hierarchy collapses exactly:
    #   x_u = ((sum_{i,w} emb_u) @ w1 + I*W*b1) @ w2 + I*b2
    # and sum_{i,w} emb_u == counts_u @ word_table (one MXU matmul).
    s = jnp.dot(counts_ref[...], wt_ref[...], preferred_element_type=jnp.float32)
    item = jnp.dot(s, w1_ref[...], preferred_element_type=jnp.float32) \
        + b1_ref[...] * float(n_items * n_words)
    xb = jnp.dot(item, w2_ref[...], preferred_element_type=jnp.float32) \
        + b2_ref[...] * float(n_items)
    row0 = pl.multiple_of(step * tu, tu)
    x_scr[pl.ds(row0, tu), :] = xb            # stays VMEM-resident, never hits HBM

    # ---- finalize: InstanceNorm + GAT#1 + GAT#2 + mean over heads ----------
    @pl.when(step == pl.num_programs(0) - 1)
    def _():
        # padded users carry bias-only garbage rows; exclude them here (the
        # adjacency only addresses the first n_users src nodes anyway).
        x = x_scr[0:n_users, :]
        mean = jnp.mean(x, axis=0, keepdims=True)
        var = jnp.mean((x - mean) ** 2, axis=0, keepdims=True)
        x = (x - mean) * jax.lax.rsqrt(var + 1e-5) * g_ref[...] + bt_ref[...]

        h1 = _dense_gat(adj0_ref[...], x, gw1_ref[...], al1_ref[...],
                        ar1_ref[...], gb1_ref[...], n_dst=n_dst0,
                        heads=heads1, out_feats=f1, neg_slope=neg_slope,
                        apply_elu=True)
        h2 = _dense_gat(adj1_ref[...], h1, gw2_ref[...], al2_ref[...],
                        ar2_ref[...], gb2_ref[...], n_dst=n_dst1,
                        heads=heads2, out_feats=f2, neg_slope=neg_slope,
                        apply_elu=False)
        acc = h2[:, :f2]
        for hd in range(1, heads2):           # mean over heads (== .mean(1))
            acc = acc + h2[:, hd * f2:(hd + 1) * f2]
        o_ref[...] = acc * (1.0 / heads2)


# ---------------------------------------------------------------------------
# wrapper / full forward
# ---------------------------------------------------------------------------
def hgat_forward(params, user_word, adj0, adj1, labels, *, neg_slope=0.2,
                 tu_target=512):
    # The exact-sum elision of word/item attention is valid only for
    # single-column attention vectors (softmax over a singleton axis == 1).
    assert params["attn1"].shape[-1] == 1 and params["attn2"].shape[-1] == 1

    vocab, emb_dim = params["word_table"].shape
    n_users, n_items, n_words = user_word.shape
    n_dst0, n_src0 = adj0.shape
    n_dst1 = adj1.shape[0]
    assert n_src0 == n_users

    user_dim = params["w2"].shape[1]
    f1, heads1 = params["g1_al"].shape
    f2, heads2 = params["g2_al"].shape

    # Word-count histogram per user (the gather+double-sum rewritten so the
    # heavy part becomes a counts @ word_table MXU matmul inside the kernel).
    # TODO(synk): for large vocabularies, scalar-prefetch user_word and
    # DMA-gather word_table rows inside the kernel instead of a dense histogram.
    flat = user_word.reshape(n_users, n_items * n_words)
    counts = jnp.zeros((n_users, vocab), jnp.float32).at[
        jnp.arange(n_users)[:, None], flat].add(1.0)

    # TU: sublane-aligned user batch per grid step; big enough to fill the MXU
    # M-dim, small enough that the double-buffered counts block stays inside a
    # conservative VMEM budget (sized against v7x's 64 MiB physical VMEM).
    vmem_budget = 24 * 1024 * 1024
    tu_cap = max(8, (vmem_budget // (2 * 4 * vocab)) // 8 * 8)
    tu = max(8, min(tu_target, tu_cap, pl.cdiv(n_users, 8) * 8))
    n_pad = pl.cdiv(n_users, tu) * tu
    if n_pad != n_users:
        counts = jnp.concatenate(
            [counts, jnp.zeros((n_pad - n_users, vocab), jnp.float32)], axis=0)

    al1e, ar1e = _expand_attn(params["g1_al"]), _expand_attn(params["g1_ar"])
    al2e, ar2e = _expand_attn(params["g2_al"]), _expand_attn(params["g2_ar"])
    gb1 = params["g1_b"].reshape(1, heads1 * f1)
    gb2 = params["g2_b"].reshape(1, heads2 * f2)
    adj0b = adj0.astype(jnp.bfloat16)   # 0/1 mask: exact in bf16, half the DMA
    adj1b = adj1.astype(jnp.bfloat16)

    args = (counts, params["word_table"], params["w1"], params["b1"],
            params["w2"], params["b2"], params["in_gamma"], params["in_beta"],
            adj0b, params["g1_w"], al1e, ar1e, gb1,
            adj1b, params["g2_w"], al2e, ar2e, gb2)

    def _full(a):
        return pl.BlockSpec(a.shape, lambda i: (0,) * a.ndim)

    in_specs = [pl.BlockSpec((tu, vocab), lambda i: (i, 0))] + \
               [_full(a) for a in args[1:]]

    vmem_need = (2 * sum(int(a.size) * a.dtype.itemsize for a in args)
                 + n_pad * user_dim * 4 + n_dst1 * f2 * 4)
    vmem_limit = int(min(max(4 * vmem_need, 8 << 20), 48 << 20))

    kernel = functools.partial(
        hgat_kernel, tu=tu, n_users=n_users, n_items=n_items, n_words=n_words,
        n_dst0=n_dst0, n_dst1=n_dst1, heads1=heads1, f1=f1, heads2=heads2,
        f2=f2, neg_slope=neg_slope)

    out = pl.pallas_call(
        kernel,
        out_shape=jax.ShapeDtypeStruct((n_dst1, f2), jnp.float32),
        grid=(n_pad // tu,),
        in_specs=in_specs,
        out_specs=pl.BlockSpec((n_dst1, f2), lambda i: (0, 0)),
        scratch_shapes=[pltpu.VMEM((n_pad, user_dim), jnp.float32)],
        compiler_params=pltpu.CompilerParams(
            dimension_semantics=("arbitrary",),
            vmem_limit_bytes=vmem_limit),
    )(*args)
    # TODO(synk): for graphs whose dense adjacency no longer fits v7x's 64 MiB
    # VMEM, give the GAT stage a dst-row-tiled "parallel" grid axis instead of
    # the single finalize step.
    return out, labels


# ---------------------------------------------------------------------------
# Pure-JAX reference (mirrors the torch forward, full softmax paths)
# ---------------------------------------------------------------------------
def _gat_reference(adj, h, w, attn_l, attn_r, bias, neg_slope, apply_elu):
    n_dst = adj.shape[0]
    out_feats, heads = attn_l.shape
    fs = (h @ w).reshape(h.shape[0], heads, out_feats)
    el = jnp.einsum('uhf,fh->uh', fs, attn_l)
    er = jnp.einsum('vhf,fh->vh', fs[:n_dst], attn_r)
    e = er[:, None, :] + el[None, :, :]
    e = jnp.where(e > 0, e, neg_slope * e)
    e = jnp.where(adj[:, :, None] > 0, e, -1e30)
    e = e - e.max(axis=1, keepdims=True)
    p = jnp.exp(e) * adj[:, :, None]
    alpha = p / jnp.maximum(p.sum(axis=1, keepdims=True), 1e-30)
    out = jnp.einsum('vuh,uhf->vhf', alpha, fs) + bias[None]
    if apply_elu:
        out = jnp.where(out > 0, out, jnp.exp(out) - 1.0)
    return out.reshape(n_dst, heads * out_feats)


def hgat_reference(params, user_word, adj0, adj1, neg_slope=0.2):
    emb = params["word_table"][user_word]
    wf = emb @ params["w1"] + params["b1"]
    c1 = _softmax_lastdim(jnp.tanh(wf) @ params["attn1"])
    c1 = jnp.swapaxes(c1, 2, 3)
    item = jnp.matmul(c1, wf)[:, :, 0, :]
    item = item @ params["w2"] + params["b2"]
    c2 = _softmax_lastdim(jnp.tanh(item) @ params["attn2"])
    c2 = jnp.swapaxes(c2, 1, 2)
    x = jnp.matmul(c2, item)[:, 0, :]
    mean = x.mean(axis=0, keepdims=True)
    var = ((x - mean) ** 2).mean(axis=0, keepdims=True)
    x = (x - mean) * jax.lax.rsqrt(var + 1e-5) * params["in_gamma"] + params["in_beta"]
    x = _gat_reference(adj0, x, params["g1_w"], params["g1_al"],
                       params["g1_ar"], params["g1_b"], neg_slope, True)
    x = _gat_reference(adj1, x, params["g2_w"], params["g2_al"],
                       params["g2_ar"], params["g2_b"], neg_slope, False)
    out_feats, heads = params["g2_al"].shape
    return x.reshape(x.shape[0], heads, out_feats).mean(axis=1)


if __name__ == "__main__":
    # small config; note user_dim == in_size is required by InstanceNorm1d(in_size)
    n_src0, n_dst0, n_dst1 = 16, 8, 4          # block0 src/dst, block1 dst
    n_items, n_words = 4, 6
    vocab, emb_dim = 32, 8
    item_dim = 16
    user_dim = in_size = 16
    hidden_size, out_size = 8, 8
    heads = (2, 2)
    neg_slope = 0.2

    key = jax.random.PRNGKey(0)
    ks = jax.random.split(key, 16)

    def xavier(k, shape):
        lim = (6.0 / (shape[0] + shape[1])) ** 0.5
        return jax.random.uniform(k, shape, jnp.float32, -lim, lim)

    params = {
        "word_table": jax.random.normal(ks[0], (vocab, emb_dim), jnp.float32) * 0.5,
        "w1": xavier(ks[1], (emb_dim, item_dim)),
        "b1": jnp.zeros((1, item_dim), jnp.float32),        # init.constant_(bias1, 0)
        "attn1": xavier(ks[2], (item_dim, 1)),
        "w2": xavier(ks[3], (item_dim, user_dim)),
        "b2": jnp.zeros((1, user_dim), jnp.float32),
        "attn2": xavier(ks[4], (user_dim, 1)),
        "in_gamma": jnp.ones((1, in_size), jnp.float32),    # InstanceNorm affine init
        "in_beta": jnp.zeros((1, in_size), jnp.float32),
        # GAT layer 1: in_size -> hidden_size, heads[0]  (attn stored as (F, H))
        "g1_w": xavier(ks[5], (in_size, heads[0] * hidden_size)),
        "g1_al": xavier(ks[6], (hidden_size, heads[0])),
        "g1_ar": xavier(ks[7], (hidden_size, heads[0])),
        "g1_b": jnp.zeros((heads[0], hidden_size), jnp.float32),
        # GAT layer 2: hidden_size*heads[0] -> out_size, heads[1]
        "g2_w": xavier(ks[8], (hidden_size * heads[0], heads[1] * out_size)),
        "g2_al": xavier(ks[9], (out_size, heads[1])),
        "g2_ar": xavier(ks[10], (out_size, heads[1])),
        "g2_b": jnp.zeros((heads[1], out_size), jnp.float32),
    }

    # synthetic graph blocks (dense adjacency masks; ensure no zero in-degree)
    user_word = jax.random.randint(ks[11], (n_src0, n_items, n_words), 0, vocab)
    adj0 = (jax.random.uniform(ks[12], (n_dst0, n_src0)) < 0.4).astype(jnp.float32)
    adj0 = adj0.at[jnp.arange(n_dst0), jnp.arange(n_dst0)].set(1.0)
    adj1 = (jax.random.uniform(ks[13], (n_dst1, n_dst0)) < 0.5).astype(jnp.float32)
    adj1 = adj1.at[jnp.arange(n_dst1), jnp.arange(n_dst1)].set(1.0)
    labels = jax.random.randint(ks[14], (n_dst1,), 0, 2)

    x, lab = hgat_forward(params, user_word, adj0, adj1, labels, neg_slope=neg_slope)
    x = jax.block_until_ready(x)

    ref = hgat_reference(params, user_word, adj0, adj1, neg_slope)
    assert x.shape == (n_dst1, out_size) and lab.shape == (n_dst1,)
    assert jnp.allclose(x, ref, atol=1e-3, rtol=1e-3)
    print("KERNEL_OK")
</pallas_src>

<mosaic_0001>
module attributes {stable_mosaic.version = 11 : i64} {
  func.func @hgat_kernel(%arg0: i32, %arg1: memref<16x32xf32, #tpu.memory_space<vmem>>, %arg2: memref<32x8xf32, #tpu.memory_space<vmem>>, %arg3: memref<8x16xf32, #tpu.memory_space<vmem>>, %arg4: memref<1x16xf32, #tpu.memory_space<vmem>>, %arg5: memref<16x16xf32, #tpu.memory_space<vmem>>, %arg6: memref<1x16xf32, #tpu.memory_space<vmem>>, %arg7: memref<1x16xf32, #tpu.memory_space<vmem>>, %arg8: memref<1x16xf32, #tpu.memory_space<vmem>>, %arg9: memref<8x16xbf16, #tpu.memory_space<vmem>>, %arg10: memref<16x16xf32, #tpu.memory_space<vmem>>, %arg11: memref<16x2xf32, #tpu.memory_space<vmem>>, %arg12: memref<16x2xf32, #tpu.memory_space<vmem>>, %arg13: memref<1x16xf32, #tpu.memory_space<vmem>>, %arg14: memref<4x8xbf16, #tpu.memory_space<vmem>>, %arg15: memref<16x16xf32, #tpu.memory_space<vmem>>, %arg16: memref<16x2xf32, #tpu.memory_space<vmem>>, %arg17: memref<16x2xf32, #tpu.memory_space<vmem>>, %arg18: memref<1x16xf32, #tpu.memory_space<vmem>>, %arg19: memref<4x8xf32, #tpu.memory_space<vmem>>, %arg20: memref<16x16xf32, #tpu.memory_space<vmem>>) attributes {dimension_semantics = [#tpu.dimension_semantics<arbitrary>], iteration_bounds = array<i64: 1>, scalar_prefetch = 0 : i64, scratch_operands = 1 : i64, tpu.core_type = #tpu.core_type<tc>, window_params = [{transform_indices = @transform_0, window_bounds = array<i64: 16, 32>}, {pipeline_mode = #tpu.pipeline_mode<synchronous>, transform_indices = @transform_1, window_bounds = array<i64: 32, 8>}, {pipeline_mode = #tpu.pipeline_mode<synchronous>, transform_indices = @transform_2, window_bounds = array<i64: 8, 16>}, {pipeline_mode = #tpu.pipeline_mode<synchronous>, transform_indices = @transform_3, window_bounds = array<i64: 1, 16>}, {pipeline_mode = #tpu.pipeline_mode<synchronous>, transform_indices = @transform_4, window_bounds = array<i64: 16, 16>}, {pipeline_mode = #tpu.pipeline_mode<synchronous>, transform_indices = @transform_5, window_bounds = array<i64: 1, 16>}, {pipeline_mode = #tpu.pipeline_mode<synchronous>, transform_indices = @transform_6, window_bounds = array<i64: 1, 16>}, {pipeline_mode = #tpu.pipeline_mode<synchronous>, transform_indices = @transform_7, window_bounds = array<i64: 1, 16>}, {pipeline_mode = #tpu.pipeline_mode<synchronous>, transform_indices = @transform_8, window_bounds = array<i64: 8, 16>}, {pipeline_mode = #tpu.pipeline_mode<synchronous>, transform_indices = @transform_9, window_bounds = array<i64: 16, 16>}, {pipeline_mode = #tpu.pipeline_mode<synchronous>, transform_indices = @transform_10, window_bounds = array<i64: 16, 2>}, {pipeline_mode = #tpu.pipeline_mode<synchronous>, transform_indices = @transform_11, window_bounds = array<i64: 16, 2>}, {pipeline_mode = #tpu.pipeline_mode<synchronous>, transform_indices = @transform_12, window_bounds = array<i64: 1, 16>}, {pipeline_mode = #tpu.pipeline_mode<synchronous>, transform_indices = @transform_13, window_bounds = array<i64: 4, 8>}, {pipeline_mode = #tpu.pipeline_mode<synchronous>, transform_indices = @transform_14, window_bounds = array<i64: 16, 16>}, {pipeline_mode = #tpu.pipeline_mode<synchronous>, transform_indices = @transform_15, window_bounds = array<i64: 16, 2>}, {pipeline_mode = #tpu.pipeline_mode<synchronous>, transform_indices = @transform_16, window_bounds = array<i64: 16, 2>}, {pipeline_mode = #tpu.pipeline_mode<synchronous>, transform_indices = @transform_17, window_bounds = array<i64: 1, 16>}, {pipeline_mode = #tpu.pipeline_mode<synchronous>, transform_indices = @transform_18, window_bounds = array<i64: 4, 8>}]} {
    %c0 = arith.constant 0 : index
    %c0_0 = arith.constant 0 : index
    %0 = vector.load %arg1[%c0, %c0_0] : memref<16x32xf32, #tpu.memory_space<vmem>>, vector<16x32xf32>
    %c0_1 = arith.constant 0 : index
    %c0_2 = arith.constant 0 : index
    %1 = vector.load %arg2[%c0_1, %c0_2] : memref<32x8xf32, #tpu.memory_space<vmem>>, vector<32x8xf32>
    %cst = arith.constant dense<0.000000e+00> : vector<16x8xf32>
    %2 = tpu.matmul %0, %1, %cst {dimension_numbers = #tpu.dot_dimension_numbers<[1], [0], [0], [1], [0, 0, 1, 1], [], []>} : vector<16x32xf32>, vector<32x8xf32>, vector<16x8xf32> -> vector<16x8xf32>
    %c0_3 = arith.constant 0 : index
    %c0_4 = arith.constant 0 : index
    %3 = vector.load %arg3[%c0_3, %c0_4] : memref<8x16xf32, #tpu.memory_space<vmem>>, vector<8x16xf32>
    %cst_5 = arith.constant dense<0.000000e+00> : vector<16x16xf32>
    %4 = tpu.matmul %2, %3, %cst_5 {dimension_numbers = #tpu.dot_dimension_numbers<[1], [0], [0], [1], [0, 0, 1, 1], [], []>} : vector<16x8xf32>, vector<8x16xf32>, vector<16x16xf32> -> vector<16x16xf32>
    %c0_6 = arith.constant 0 : index
    %c0_7 = arith.constant 0 : index
    %5 = vector.load %arg4[%c0_6, %c0_7] : memref<1x16xf32, #tpu.memory_space<vmem>>, vector<1x16xf32>
    %cst_8 = arith.constant 2.400000e+01 : f32
    %6 = vector.broadcast %cst_8 : f32 to vector<1x16xf32>
    %7 = arith.mulf %5, %6 : vector<1x16xf32>
    %8 = vector.broadcast %7 : vector<1x16xf32> to vector<16x16xf32>
    %9 = arith.addf %4, %8 : vector<16x16xf32>
    %c0_9 = arith.constant 0 : index
    %c0_10 = arith.constant 0 : index
    %10 = vector.load %arg5[%c0_9, %c0_10] : memref<16x16xf32, #tpu.memory_space<vmem>>, vector<16x16xf32>
    %cst_11 = arith.constant dense<0.000000e+00> : vector<16x16xf32>
    %11 = tpu.matmul %9, %10, %cst_11 {dimension_numbers = #tpu.dot_dimension_numbers<[1], [0], [0], [1], [0, 0, 1, 1], [], []>} : vector<16x16xf32>, vector<16x16xf32>, vector<16x16xf32> -> vector<16x16xf32>
    %c0_12 = arith.constant 0 : index
    %c0_13 = arith.constant 0 : index
    %12 = vector.load %arg6[%c0_12, %c0_13] : memref<1x16xf32, #tpu.memory_space<vmem>>, vector<1x16xf32>
    %cst_14 = arith.constant 4.000000e+00 : f32
    %13 = vector.broadcast %cst_14 : f32 to vector<1x16xf32>
    %14 = arith.mulf %12, %13 : vector<1x16xf32>
    %15 = vector.broadcast %14 : vector<1x16xf32> to vector<16x16xf32>
    %16 = arith.addf %11, %15 : vector<16x16xf32>
    %c16_i32 = arith.constant 16 : i32
    %17 = arith.muli %arg0, %c16_i32 : i32
    %18 = tpu.assume_multiple %17, 16 : i32
    %19 = arith.index_cast %18 : i32 to index
    %c0_15 = arith.constant 0 : index
    %20 = vector.load %arg20[%19, %c0_15] : memref<16x16xf32, #tpu.memory_space<vmem>>, vector<16x16xf32>
    tpu.vector_store %arg20[%19, %c0_15], %16 {strides = array<i32>} : memref<16x16xf32, #tpu.memory_space<vmem>>, vector<16x16xf32>,
    %c0_i32 = arith.constant 0 : i32
    %21 = arith.cmpi eq, %arg0, %c0_i32 : i32
    %22 = arith.extui %21 : i1 to i32
    %c0_i32_16 = arith.constant 0 : i32
    %23 = arith.cmpi ne, %22, %c0_i32_16 : i32
    scf.if %23 {
      %c0_17 = arith.constant 0 : index
      %c0_18 = arith.constant 0 : index
      %24 = vector.load %arg20[%c0_17, %c0_18] : memref<16x16xf32, #tpu.memory_space<vmem>>, vector<16x16xf32>
      %cst_19 = arith.constant dense<0.000000e+00> : vector<16xf32>
      %25 = vector.multi_reduction <add>, %24, %cst_19 [0] : vector<16x16xf32> to vector<16xf32>
      %26 = vector.shape_cast %25 : vector<16xf32> to vector<1x16xf32>
      %cst_20 = arith.constant 1.600000e+01 : f32
      %27 = vector.broadcast %cst_20 : f32 to vector<1x16xf32>
      %28 = arith.divf %26, %27 : vector<1x16xf32>
      %29 = vector.broadcast %28 : vector<1x16xf32> to vector<16x16xf32>
      %30 = arith.subf %24, %29 : vector<16x16xf32>
      %31 = arith.mulf %30, %30 : vector<16x16xf32>
      %cst_21 = arith.constant dense<0.000000e+00> : vector<16xf32>
      %32 = vector.multi_reduction <add>, %31, %cst_21 [0] : vector<16x16xf32> to vector<16xf32>
      %33 = vector.shape_cast %32 : vector<16xf32> to vector<1x16xf32>
      %cst_22 = arith.constant 1.600000e+01 : f32
      %34 = vector.broadcast %cst_22 : f32 to vector<1x16xf32>
      %35 = arith.divf %33, %34 : vector<1x16xf32>
      %36 = vector.broadcast %28 : vector<1x16xf32> to vector<16x16xf32>
      %37 = arith.subf %24, %36 : vector<16x16xf32>
      %cst_23 = arith.constant 9.99999974E-6 : f32
      %38 = vector.broadcast %cst_23 : f32 to vector<1x16xf32>
      %39 = arith.addf %35, %38 : vector<1x16xf32>
      %40 = math.rsqrt %39 : vector<1x16xf32>
      %41 = vector.broadcast %40 : vector<1x16xf32> to vector<16x16xf32>
      %42 = arith.mulf %37, %41 : vector<16x16xf32>
      %c0_24 = arith.constant 0 : index
      %c0_25 = arith.constant 0 : index
      %43 = vector.load %arg7[%c0_24, %c0_25] : memref<1x16xf32, #tpu.memory_space<vmem>>, vector<1x16xf32>
      %44 = vector.broadcast %43 : vector<1x16xf32> to vector<16x16xf32>
      %45 = arith.mulf %42, %44 : vector<16x16xf32>
      %c0_26 = arith.constant 0 : index
      %c0_27 = arith.constant 0 : index
      %46 = vector.load %arg8[%c0_26, %c0_27] : memref<1x16xf32, #tpu.memory_space<vmem>>, vector<1x16xf32>
      %47 = vector.broadcast %46 : vector<1x16xf32> to vector<16x16xf32>
      %48 = arith.addf %45, %47 : vector<16x16xf32>
      %c0_28 = arith.constant 0 : index
      %c0_29 = arith.constant 0 : index
      %49 = vector.load %arg9[%c0_28, %c0_29] : memref<8x16xbf16, #tpu.memory_space<vmem>>, vector<8x16xbf16>
      %c0_30 = arith.constant 0 : index
      %c0_31 = arith.constant 0 : index
      %50 = vector.load %arg10[%c0_30, %c0_31] : memref<16x16xf32, #tpu.memory_space<vmem>>, vector<16x16xf32>
      %c0_32 = arith.constant 0 : index
      %c0_33 = arith.constant 0 : index
      %51 = vector.load %arg11[%c0_32, %c0_33] : memref<16x2xf32, #tpu.memory_space<vmem>>, vector<16x2xf32>
      %c0_34 = arith.constant 0 : index
      %c0_35 = arith.constant 0 : index
      %52 = vector.load %arg12[%c0_34, %c0_35] : memref<16x2xf32, #tpu.memory_space<vmem>>, vector<16x2xf32>
      %c0_36 = arith.constant 0 : index
      %c0_37 = arith.constant 0 : index
      %53 = vector.load %arg13[%c0_36, %c0_37] : memref<1x16xf32, #tpu.memory_space<vmem>>, vector<1x16xf32>
      %cst_38 = arith.constant dense<0.000000e+00> : vector<16x16xf32>
      %54 = tpu.matmul %48, %50, %cst_38 {dimension_numbers = #tpu.dot_dimension_numbers<[1], [0], [0], [1], [0, 0, 1, 1], [], []>} : vector<16x16xf32>, vector<16x16xf32>, vector<16x16xf32> -> vector<16x16xf32>
      %cst_39 = arith.constant dense<0.000000e+00> : vector<16x2xf32>
      %55 = tpu.matmul %54, %51, %cst_39 {dimension_numbers = #tpu.dot_dimension_numbers<[1], [0], [0], [1], [0, 0, 1, 1], [], []>} : vector<16x16xf32>, vector<16x2xf32>, vector<16x2xf32> -> vector<16x2xf32>
      %56 = vector.extract_strided_slice %54 {offsets = [0, 0], sizes = [8, 16], strides = [1, 1]} : vector<16x16xf32> to vector<8x16xf32>
      %cst_40 = arith.constant dense<0.000000e+00> : vector<8x2xf32>
      %57 = tpu.matmul %56, %52, %cst_40 {dimension_numbers = #tpu.dot_dimension_numbers<[1], [0], [0], [1], [0, 0, 1, 1], [], []>} : vector<8x16xf32>, vector<16x2xf32>, vector<8x2xf32> -> vector<8x2xf32>
      %58 = tpu.transpose %55, [1, 0] : vector<16x2xf32> -> vector<2x16xf32>
      %cst_41 = arith.constant 0.000000e+00 : bf16
      %59 = vector.broadcast %cst_41 : bf16 to vector<8x16xbf16>
      %60 = arith.cmpf ogt, %49, %59 : vector<8x16xbf16>
      %61 = tpu.iota {dimensions = array<i32: 1>} : vector<1x16xi32>
      %cst_42 = arith.constant 0.000000e+00 : f32
      %62 = vector.broadcast %cst_42 : f32 to vector<8x16xf32>
      %c0_i32_43 = arith.constant 0 : i32
      %63 = vector.broadcast %c0_i32_43 : i32 to vector<1x16xi32>
      %64 = arith.cmpi sge, %61, %63 : vector<1x16xi32>
      %c8_i32 = arith.constant 8 : i32
      %65 = vector.broadcast %c8_i32 : i32 to vector<1x16xi32>
      %66 = arith.cmpi slt, %61, %65 : vector<1x16xi32>
      %67 = arith.andi %64, %66 : vector<1x16xi1>
      %68 = arith.extui %67 : vector<1x16xi1> to vector<1x16xi32>
      %69 = arith.sitofp %68 : vector<1x16xi32> to vector<1x16xf32>
      %70 = vector.extract_strided_slice %57 {offsets = [0, 0], sizes = [8, 1], strides = [1, 1]} : vector<8x2xf32> to vector<8x1xf32>
      %71 = vector.extract_strided_slice %58 {offsets = [0, 0], sizes = [1, 16], strides = [1, 1]} : vector<2x16xf32> to vector<1x16xf32>
      %72 = vector.broadcast %70 : vector<8x1xf32> to vector<8x16xf32>
      %73 = vector.broadcast %71 : vector<1x16xf32> to vector<8x16xf32>
      %74 = arith.addf %72, %73 : vector<8x16xf32>
      %cst_44 = arith.constant 0.000000e+00 : f32
      %75 = vector.broadcast %cst_44 : f32 to vector<8x16xf32>
      %76 = arith.cmpf ogt, %74, %75 : vector<8x16xf32>
      %cst_45 = arith.constant 2.000000e-01 : f32
      %77 = vector.broadcast %cst_45 : f32 to vector<8x16xf32>
      %78 = arith.mulf %77, %74 : vector<8x16xf32>
      %79 = arith.select %76, %74, %78 : vector<8x16xi1>, vector<8x16xf32>
      %cst_46 = arith.constant -1.000000e+30 : f32
      %80 = vector.broadcast %cst_46 : f32 to vector<8x16xf32>
      %81 = arith.select %60, %79, %80 : vector<8x16xi1>, vector<8x16xf32>
      %cst_47 = arith.constant dense<0xFF800000> : vector<8xf32>
      %82 = vector.multi_reduction <maximumf>, %81, %cst_47 [1] : vector<8x16xf32> to vector<8xf32>
      %83 = vector.shape_cast %82 : vector<8xf32> to vector<8x1xf32>
      %84 = vector.broadcast %83 : vector<8x1xf32> to vector<8x16xf32>
      %85 = arith.subf %81, %84 : vector<8x16xf32>
      %86 = math.exp %85 : vector<8x16xf32>
      %cst_48 = arith.constant 0.000000e+00 : f32
      %87 = vector.broadcast %cst_48 : f32 to vector<8x16xf32>
      %88 = arith.select %60, %86, %87 : vector<8x16xi1>, vector<8x16xf32>
      %cst_49 = arith.constant dense<0.000000e+00> : vector<8xf32>
      %89 = vector.multi_reduction <add>, %88, %cst_49 [1] : vector<8x16xf32> to vector<8xf32>
      %90 = vector.shape_cast %89 : vector<8xf32> to vector<8x1xf32>
      %cst_50 = arith.constant 1.000000e-30 : f32
      %91 = vector.broadcast %cst_50 : f32 to vector<8x1xf32>
      %92 = arith.maximumf %90, %91 : vector<8x1xf32>
      %93 = vector.broadcast %92 : vector<8x1xf32> to vector<8x16xf32>
      %94 = arith.divf %88, %93 : vector<8x16xf32>
      %95 = vector.broadcast %69 : vector<1x16xf32> to vector<16x16xf32>
      %96 = arith.mulf %54, %95 : vector<16x16xf32>
      %cst_51 = arith.constant dense<0.000000e+00> : vector<8x16xf32>
      %97 = tpu.matmul %94, %96, %cst_51 {dimension_numbers = #tpu.dot_dimension_numbers<[1], [0], [0], [1], [0, 0, 1, 1], [], []>} : vector<8x16xf32>, vector<16x16xf32>, vector<8x16xf32> -> vector<8x16xf32>
      %98 = arith.addf %62, %97 : vector<8x16xf32>
      %c8_i32_52 = arith.constant 8 : i32
      %99 = vector.broadcast %c8_i32_52 : i32 to vector<1x16xi32>
      %100 = arith.cmpi sge, %61, %99 : vector<1x16xi32>
      %c16_i32_53 = arith.constant 16 : i32
      %101 = vector.broadcast %c16_i32_53 : i32 to vector<1x16xi32>
      %102 = arith.cmpi slt, %61, %101 : vector<1x16xi32>
      %103 = arith.andi %100, %102 : vector<1x16xi1>
      %104 = arith.extui %103 : vector<1x16xi1> to vector<1x16xi32>
      %105 = arith.sitofp %104 : vector<1x16xi32> to vector<1x16xf32>
      %106 = vector.extract_strided_slice %57 {offsets = [0, 1], sizes = [8, 1], strides = [1, 1]} : vector<8x2xf32> to vector<8x1xf32>
      %107 = vector.extract_strided_slice %58 {offsets = [1, 0], sizes = [1, 16], strides = [1, 1]} : vector<2x16xf32> to vector<1x16xf32>
      %108 = vector.broadcast %106 : vector<8x1xf32> to vector<8x16xf32>
      %109 = vector.broadcast %107 : vector<1x16xf32> to vector<8x16xf32>
      %110 = arith.addf %108, %109 : vector<8x16xf32>
      %cst_54 = arith.constant 0.000000e+00 : f32
      %111 = vector.broadcast %cst_54 : f32 to vector<8x16xf32>
      %112 = arith.cmpf ogt, %110, %111 : vector<8x16xf32>
      %cst_55 = arith.constant 2.000000e-01 : f32
      %113 = vector.broadcast %cst_55 : f32 to vector<8x16xf32>
      %114 = arith.mulf %113, %110 : vector<8x16xf32>
      %115 = arith.select %112, %110, %114 : vector<8x16xi1>, vector<8x16xf32>
      %cst_56 = arith.constant -1.000000e+30 : f32
      %116 = vector.broadcast %cst_56 : f32 to vector<8x16xf32>
      %117 = arith.select %60, %115, %116 : vector<8x16xi1>, vector<8x16xf32>
      %cst_57 = arith.constant dense<0xFF800000> : vector<8xf32>
      %118 = vector.multi_reduction <maximumf>, %117, %cst_57 [1] : vector<8x16xf32> to vector<8xf32>
      %119 = vector.shape_cast %118 : vector<8xf32> to vector<8x1xf32>
      %120 = vector.broadcast %119 : vector<8x1xf32> to vector<8x16xf32>
      %121 = arith.subf %117, %120 : vector<8x16xf32>
      %122 = math.exp %121 : vector<8x16xf32>
      %cst_58 = arith.constant 0.000000e+00 : f32
      %123 = vector.broadcast %cst_58 : f32 to vector<8x16xf32>
      %124 = arith.select %60, %122, %123 : vector<8x16xi1>, vector<8x16xf32>
      %cst_59 = arith.constant dense<0.000000e+00> : vector<8xf32>
      %125 = vector.multi_reduction <add>, %124, %cst_59 [1] : vector<8x16xf32> to vector<8xf32>
      %126 = vector.shape_cast %125 : vector<8xf32> to vector<8x1xf32>
      %cst_60 = arith.constant 1.000000e-30 : f32
      %127 = vector.broadcast %cst_60 : f32 to vector<8x1xf32>
      %128 = arith.maximumf %126, %127 : vector<8x1xf32>
      %129 = vector.broadcast %128 : vector<8x1xf32> to vector<8x16xf32>
      %130 = arith.divf %124, %129 : vector<8x16xf32>
      %131 = vector.broadcast %105 : vector<1x16xf32> to vector<16x16xf32>
      %132 = arith.mulf %54, %131 : vector<16x16xf32>
      %cst_61 = arith.constant dense<0.000000e+00> : vector<8x16xf32>
      %133 = tpu.matmul %130, %132, %cst_61 {dimension_numbers = #tpu.dot_dimension_numbers<[1], [0], [0], [1], [0, 0, 1, 1], [], []>} : vector<8x16xf32>, vector<16x16xf32>, vector<8x16xf32> -> vector<8x16xf32>
      %134 = arith.addf %98, %133 : vector<8x16xf32>
      %135 = vector.broadcast %53 : vector<1x16xf32> to vector<8x16xf32>
      %136 = arith.addf %134, %135 : vector<8x16xf32>
      %cst_62 = arith.constant 0.000000e+00 : f32
      %137 = vector.broadcast %cst_62 : f32 to vector<8x16xf32>
      %138 = arith.cmpf ogt, %136, %137 : vector<8x16xf32>
      %139 = math.exp %136 : vector<8x16xf32>
      %cst_63 = arith.constant 1.000000e+00 : f32
      %140 = vector.broadcast %cst_63 : f32 to vector<8x16xf32>
      %141 = arith.subf %139, %140 : vector<8x16xf32>
      %142 = arith.select %138, %136, %141 : vector<8x16xi1>, vector<8x16xf32>
      %c0_64 = arith.constant 0 : index
      %c0_65 = arith.constant 0 : index
      %143 = vector.load %arg14[%c0_64, %c0_65] : memref<4x8xbf16, #tpu.memory_space<vmem>>, vector<4x8xbf16>
      %c0_66 = arith.constant 0 : index
      %c0_67 = arith.constant 0 : index
      %144 = vector.load %arg15[%c0_66, %c0_67] : memref<16x16xf32, #tpu.memory_space<vmem>>, vector<16x16xf32>
      %c0_68 = arith.constant 0 : index
      %c0_69 = arith.constant 0 : index
      %145 = vector.load %arg16[%c0_68, %c0_69] : memref<16x2xf32, #tpu.memory_space<vmem>>, vector<16x2xf32>
      %c0_70 = arith.constant 0 : index
      %c0_71 = arith.constant 0 : index
      %146 = vector.load %arg17[%c0_70, %c0_71] : memref<16x2xf32, #tpu.memory_space<vmem>>, vector<16x2xf32>
      %c0_72 = arith.constant 0 : index
      %c0_73 = arith.constant 0 : index
      %147 = vector.load %arg18[%c0_72, %c0_73] : memref<1x16xf32, #tpu.memory_space<vmem>>, vector<1x16xf32>
      %cst_74 = arith.constant dense<0.000000e+00> : vector<8x16xf32>
      %148 = tpu.matmul %142, %144, %cst_74 {dimension_numbers = #tpu.dot_dimension_numbers<[1], [0], [0], [1], [0, 0, 1, 1], [], []>} : vector<8x16xf32>, vector<16x16xf32>, vector<8x16xf32> -> vector<8x16xf32>
      %cst_75 = arith.constant dense<0.000000e+00> : vector<8x2xf32>
      %149 = tpu.matmul %148, %145, %cst_75 {dimension_numbers = #tpu.dot_dimension_numbers<[1], [0], [0], [1], [0, 0, 1, 1], [], []>} : vector<8x16xf32>, vector<16x2xf32>, vector<8x2xf32> -> vector<8x2xf32>
      %150 = vector.extract_strided_slice %148 {offsets = [0, 0], sizes = [4, 16], strides = [1, 1]} : vector<8x16xf32> to vector<4x16xf32>
      %cst_76 = arith.constant dense<0.000000e+00> : vector<4x2xf32>
      %151 = tpu.matmul %150, %146, %cst_76 {dimension_numbers = #tpu.dot_dimension_numbers<[1], [0], [0], [1], [0, 0, 1, 1], [], []>} : vector<4x16xf32>, vector<16x2xf32>, vector<4x2xf32> -> vector<4x2xf32>
      %152 = tpu.transpose %149, [1, 0] : vector<8x2xf32> -> vector<2x8xf32>
      %cst_77 = arith.constant 0.000000e+00 : bf16
      %153 = vector.broadcast %cst_77 : bf16 to vector<4x8xbf16>
      %154 = arith.cmpf ogt, %143, %153 : vector<4x8xbf16>
      %155 = tpu.iota {dimensions = array<i32: 1>} : vector<1x16xi32>
      %cst_78 = arith.constant 0.000000e+00 : f32
      %156 = vector.broadcast %cst_78 : f32 to vector<4x16xf32>
      %c0_i32_79 = arith.constant 0 : i32
      %157 = vector.broadcast %c0_i32_79 : i32 to vector<1x16xi32>
      %158 = arith.cmpi sge, %155, %157 : vector<1x16xi32>
      %c8_i32_80 = arith.constant 8 : i32
      %159 = vector.broadcast %c8_i32_80 : i32 to vector<1x16xi32>
      %160 = arith.cmpi slt, %155, %159 : vector<1x16xi32>
      %161 = arith.andi %158, %160 : vector<1x16xi1>
      %162 = arith.extui %161 : vector<1x16xi1> to vector<1x16xi32>
      %163 = arith.sitofp %162 : vector<1x16xi32> to vector<1x16xf32>
      %164 = vector.extract_strided_slice %151 {offsets = [0, 0], sizes = [4, 1], strides = [1, 1]} : vector<4x2xf32> to vector<4x1xf32>
      %165 = vector.extract_strided_slice %152 {offsets = [0, 0], sizes = [1, 8], strides = [1, 1]} : vector<2x8xf32> to vector<1x8xf32>
      %166 = vector.broadcast %164 : vector<4x1xf32> to vector<4x8xf32>
      %167 = vector.broadcast %165 : vector<1x8xf32> to vector<4x8xf32>
      %168 = arith.addf %166, %167 : vector<4x8xf32>
      %cst_81 = arith.constant 0.000000e+00 : f32
      %169 = vector.broadcast %cst_81 : f32 to vector<4x8xf32>
      %170 = arith.cmpf ogt, %168, %169 : vector<4x8xf32>
      %cst_82 = arith.constant 2.000000e-01 : f32
      %171 = vector.broadcast %cst_82 : f32 to vector<4x8xf32>
      %172 = arith.mulf %171, %168 : vector<4x8xf32>
      %173 = arith.select %170, %168, %172 : vector<4x8xi1>, vector<4x8xf32>
      %cst_83 = arith.constant -1.000000e+30 : f32
      %174 = vector.broadcast %cst_83 : f32 to vector<4x8xf32>
      %175 = arith.select %154, %173, %174 : vector<4x8xi1>, vector<4x8xf32>
      %cst_84 = arith.constant dense<0xFF800000> : vector<4xf32>
      %176 = vector.multi_reduction <maximumf>, %175, %cst_84 [1] : vector<4x8xf32> to vector<4xf32>
      %177 = vector.shape_cast %176 : vector<4xf32> to vector<4x1xf32>
      %178 = vector.broadcast %177 : vector<4x1xf32> to vector<4x8xf32>
      %179 = arith.subf %175, %178 : vector<4x8xf32>
      %180 = math.exp %179 : vector<4x8xf32>
      %cst_85 = arith.constant 0.000000e+00 : f32
      %181 = vector.broadcast %cst_85 : f32 to vector<4x8xf32>
      %182 = arith.select %154, %180, %181 : vector<4x8xi1>, vector<4x8xf32>
      %cst_86 = arith.constant dense<0.000000e+00> : vector<4xf32>
      %183 = vector.multi_reduction <add>, %182, %cst_86 [1] : vector<4x8xf32> to vector<4xf32>
      %184 = vector.shape_cast %183 : vector<4xf32> to vector<4x1xf32>
      %cst_87 = arith.constant 1.000000e-30 : f32
      %185 = vector.broadcast %cst_87 : f32 to vector<4x1xf32>
      %186 = arith.maximumf %184, %185 : vector<4x1xf32>
      %187 = vector.broadcast %186 : vector<4x1xf32> to vector<4x8xf32>
      %188 = arith.divf %182, %187 : vector<4x8xf32>
      %189 = vector.broadcast %163 : vector<1x16xf32> to vector<8x16xf32>
      %190 = arith.mulf %148, %189 : vector<8x16xf32>
      %cst_88 = arith.constant dense<0.000000e+00> : vector<4x16xf32>
      %191 = tpu.matmul %188, %190, %cst_88 {dimension_numbers = #tpu.dot_dimension_numbers<[1], [0], [0], [1], [0, 0, 1, 1], [], []>} : vector<4x8xf32>, vector<8x16xf32>, vector<4x16xf32> -> vector<4x16xf32>
      %192 = arith.addf %156, %191 : vector<4x16xf32>
      %c8_i32_89 = arith.constant 8 : i32
      %193 = vector.broadcast %c8_i32_89 : i32 to vector<1x16xi32>
      %194 = arith.cmpi sge, %155, %193 : vector<1x16xi32>
      %c16_i32_90 = arith.constant 16 : i32
      %195 = vector.broadcast %c16_i32_90 : i32 to vector<1x16xi32>
      %196 = arith.cmpi slt, %155, %195 : vector<1x16xi32>
      %197 = arith.andi %194, %196 : vector<1x16xi1>
      %198 = arith.extui %197 : vector<1x16xi1> to vector<1x16xi32>
      %199 = arith.sitofp %198 : vector<1x16xi32> to vector<1x16xf32>
      %200 = vector.extract_strided_slice %151 {offsets = [0, 1], sizes = [4, 1], strides = [1, 1]} : vector<4x2xf32> to vector<4x1xf32>
      %201 = vector.extract_strided_slice %152 {offsets = [1, 0], sizes = [1, 8], strides = [1, 1]} : vector<2x8xf32> to vector<1x8xf32>
      %202 = vector.broadcast %200 : vector<4x1xf32> to vector<4x8xf32>
      %203 = vector.broadcast %201 : vector<1x8xf32> to vector<4x8xf32>
      %204 = arith.addf %202, %203 : vector<4x8xf32>
      %cst_91 = arith.constant 0.000000e+00 : f32
      %205 = vector.broadcast %cst_91 : f32 to vector<4x8xf32>
      %206 = arith.cmpf ogt, %204, %205 : vector<4x8xf32>
      %cst_92 = arith.constant 2.000000e-01 : f32
      %207 = vector.broadcast %cst_92 : f32 to vector<4x8xf32>
      %208 = arith.mulf %207, %204 : vector<4x8xf32>
      %209 = arith.select %206, %204, %208 : vector<4x8xi1>, vector<4x8xf32>
      %cst_93 = arith.constant -1.000000e+30 : f32
      %210 = vector.broadcast %cst_93 : f32 to vector<4x8xf32>
      %211 = arith.select %154, %209, %210 : vector<4x8xi1>, vector<4x8xf32>
      %cst_94 = arith.constant dense<0xFF800000> : vector<4xf32>
      %212 = vector.multi_reduction <maximumf>, %211, %cst_94 [1] : vector<4x8xf32> to vector<4xf32>
      %213 = vector.shape_cast %212 : vector<4xf32> to vector<4x1xf32>
      %214 = vector.broadcast %213 : vector<4x1xf32> to vector<4x8xf32>
      %215 = arith.subf %211, %214 : vector<4x8xf32>
      %216 = math.exp %215 : vector<4x8xf32>
      %cst_95 = arith.constant 0.000000e+00 : f32
      %217 = vector.broadcast %cst_95 : f32 to vector<4x8xf32>
      %218 = arith.select %154, %216, %217 : vector<4x8xi1>, vector<4x8xf32>
      %cst_96 = arith.constant dense<0.000000e+00> : vector<4xf32>
      %219 = vector.multi_reduction <add>, %218, %cst_96 [1] : vector<4x8xf32> to vector<4xf32>
      %220 = vector.shape_cast %219 : vector<4xf32> to vector<4x1xf32>
      %cst_97 = arith.constant 1.000000e-30 : f32
      %221 = vector.broadcast %cst_97 : f32 to vector<4x1xf32>
      %222 = arith.maximumf %220, %221 : vector<4x1xf32>
      %223 = vector.broadcast %222 : vector<4x1xf32> to vector<4x8xf32>
      %224 = arith.divf %218, %223 : vector<4x8xf32>
      %225 = vector.broadcast %199 : vector<1x16xf32> to vector<8x16xf32>
      %226 = arith.mulf %148, %225 : vector<8x16xf32>
      %cst_98 = arith.constant dense<0.000000e+00> : vector<4x16xf32>
      %227 = tpu.matmul %224, %226, %cst_98 {dimension_numbers = #tpu.dot_dimension_numbers<[1], [0], [0], [1], [0, 0, 1, 1], [], []>} : vector<4x8xf32>, vector<8x16xf32>, vector<4x16xf32> -> vector<4x16xf32>
      %228 = arith.addf %192, %227 : vector<4x16xf32>
      %229 = vector.broadcast %147 : vector<1x16xf32> to vector<4x16xf32>
      %230 = arith.addf %228, %229 : vector<4x16xf32>
      %231 = vector.extract_strided_slice %230 {offsets = [0, 0], sizes = [4, 8], strides = [1, 1]} : vector<4x16xf32> to vector<4x8xf32>
      %232 = vector.extract_strided_slice %230 {offsets = [0, 8], sizes = [4, 8], strides = [1, 1]} : vector<4x16xf32> to vector<4x8xf32>
      %233 = arith.addf %231, %232 : vector<4x8xf32>
      %cst_99 = arith.constant 5.000000e-01 : f32
      %234 = vector.broadcast %cst_99 : f32 to vector<4x8xf32>
      %235 = arith.mulf %233, %234 : vector<4x8xf32>
      %c0_100 = arith.constant 0 : index
      %c0_101 = arith.constant 0 : index
      %236 = vector.load %arg19[%c0_100, %c0_101] : memref<4x8xf32, #tpu.memory_space<vmem>>, vector<4x8xf32>
      tpu.vector_store %arg19[%c0_100, %c0_101], %235 {strides = array<i32>} : memref<4x8xf32, #tpu.memory_space<vmem>>, vector<4x8xf32>,
    } else {
    }
    return
  }
  func.func @transform_0(%arg0: i32) -> (i32, i32) {
    %c0_i32 = arith.constant 0 : i32
    %c0_i32_0 = arith.constant 0 : i32
    return %arg0, %c0_i32 : i32, i32
  }
  func.func @transform_1(%arg0: i32) -> (i32, i32) {
    %c0_i32 = arith.constant 0 : i32
    %c0_i32_0 = arith.constant 0 : i32
    %c0_i32_1 = arith.constant 0 : i32
    return %c0_i32, %c0_i32_0 : i32, i32
  }
  func.func @transform_2(%arg0: i32) -> (i32, i32) {
    %c0_i32 = arith.constant 0 : i32
    %c0_i32_0 = arith.constant 0 : i32
    %c0_i32_1 = arith.constant 0 : i32
    return %c0_i32, %c0_i32_0 : i32, i32
  }
  func.func @transform_3(%arg0: i32) -> (i32, i32) {
    %c0_i32 = arith.constant 0 : i32
    %c0_i32_0 = arith.constant 0 : i32
    %c0_i32_1 = arith.constant 0 : i32
    return %c0_i32, %c0_i32_0 : i32, i32
  }
  func.func @transform_4(%arg0: i32) -> (i32, i32) {
    %c0_i32 = arith.constant 0 : i32
    %c0_i32_0 = arith.constant 0 : i32
    %c0_i32_1 = arith.constant 0 : i32
    return %c0_i32, %c0_i32_0 : i32, i32
  }
  func.func @transform_5(%arg0: i32) -> (i32, i32) {
    %c0_i32 = arith.constant 0 : i32
    %c0_i32_0 = arith.constant 0 : i32
    %c0_i32_1 = arith.constant 0 : i32
    return %c0_i32, %c0_i32_0 : i32, i32
  }
  func.func @transform_6(%arg0: i32) -> (i32, i32) {
    %c0_i32 = arith.constant 0 : i32
    %c0_i32_0 = arith.constant 0 : i32
    %c0_i32_1 = arith.constant 0 : i32
    return %c0_i32, %c0_i32_0 : i32, i32
  }
  func.func @transform_7(%arg0: i32) -> (i32, i32) {
    %c0_i32 = arith.constant 0 : i32
    %c0_i32_0 = arith.constant 0 : i32
    %c0_i32_1 = arith.constant 0 : i32
    return %c0_i32, %c0_i32_0 : i32, i32
  }
  func.func @transform_8(%arg0: i32) -> (i32, i32) {
    %c0_i32 = arith.constant 0 : i32
    %c0_i32_0 = arith.constant 0 : i32
    %c0_i32_1 = arith.constant 0 : i32
    return %c0_i32, %c0_i32_0 : i32, i32
  }
  func.func @transform_9(%arg0: i32) -> (i32, i32) {
    %c0_i32 = arith.constant 0 : i32
    %c0_i32_0 = arith.constant 0 : i32
    %c0_i32_1 = arith.constant 0 : i32
    return %c0_i32, %c0_i32_0 : i32, i32
  }
  func.func @transform_10(%arg0: i32) -> (i32, i32) {
    %c0_i32 = arith.constant 0 : i32
    %c0_i32_0 = arith.constant 0 : i32
    %c0_i32_1 = arith.constant 0 : i32
    return %c0_i32, %c0_i32_0 : i32, i32
  }
  func.func @transform_11(%arg0: i32) -> (i32, i32) {
    %c0_i32 = arith.constant 0 : i32
    %c0_i32_0 = arith.constant 0 : i32
    %c0_i32_1 = arith.constant 0 : i32
    return %c0_i32, %c0_i32_0 : i32, i32
  }
  func.func @transform_12(%arg0: i32) -> (i32, i32) {
    %c0_i32 = arith.constant 0 : i32
    %c0_i32_0 = arith.constant 0 : i32
    %c0_i32_1 = arith.constant 0 : i32
    return %c0_i32, %c0_i32_0 : i32, i32
  }
  func.func @transform_13(%arg0: i32) -> (i32, i32) {
    %c0_i32 = arith.constant 0 : i32
    %c0_i32_0 = arith.constant 0 : i32
    %c0_i32_1 = arith.constant 0 : i32
    return %c0_i32, %c0_i32_0 : i32, i32
  }
  func.func @transform_14(%arg0: i32) -> (i32, i32) {
    %c0_i32 = arith.constant 0 : i32
    %c0_i32_0 = arith.constant 0 : i32
    %c0_i32_1 = arith.constant 0 : i32
    return %c0_i32, %c0_i32_0 : i32, i32
  }
  func.func @transform_15(%arg0: i32) -> (i32, i32) {
    %c0_i32 = arith.constant 0 : i32
    %c0_i32_0 = arith.constant 0 : i32
    %c0_i32_1 = arith.constant 0 : i32
    return %c0_i32, %c0_i32_0 : i32, i32
  }
  func.func @transform_16(%arg0: i32) -> (i32, i32) {
    %c0_i32 = arith.constant 0 : i32
    %c0_i32_0 = arith.constant 0 : i32
    %c0_i32_1 = arith.constant 0 : i32
    return %c0_i32, %c0_i32_0 : i32, i32
  }
  func.func @transform_17(%arg0: i32) -> (i32, i32) {
    %c0_i32 = arith.constant 0 : i32
    %c0_i32_0 = arith.constant 0 : i32
    %c0_i32_1 = arith.constant 0 : i32
    return %c0_i32, %c0_i32_0 : i32, i32
  }
  func.func @transform_18(%arg0: i32) -> (i32, i32) {
    %c0_i32 = arith.constant 0 : i32
    %c0_i32_0 = arith.constant 0 : i32
    %c0_i32_1 = arith.constant 0 : i32
    return %c0_i32, %c0_i32_0 : i32, i32
  }
}

</mosaic_0001>

<bundles_post_ra>
// kernel: tpu_custom_call.1
= control target key start
LH: loop header
LB: loop body
LE: loop exit
PB: predicated region body
PF: predicated region fallthrough
CT: control target
= control target key end

     0   :  { %s1098_s0 = inlined_call_operand.vmem [shape: f32[16,32], index: 0, kind: input, shape index: {}]   ;;  %s1099_s1 = inlined_call_operand.vmem [shape: f32[32,8], index: 1, kind: input, shape index: {}]   ;;  %s1100_s2 = inlined_call_operand.vmem [shape: f32[8,16], index: 2, kind: input, shape index: {}]   ;;  %s1101_s3 = inlined_call_operand.vmem [shape: f32[1,16], index: 3, kind: input, shape index: {}]   ;;  %s1102_s4 = inlined_call_operand.vmem [shape: f32[16,16], index: 4, kind: input, shape index: {}]   ;;  %s1103_s5 = inlined_call_operand.vmem [shape: f32[1,16], index: 5, kind: input, shape index: {}]   ;;  %s1104_s6 = inlined_call_operand.vmem [shape: f32[1,16], index: 6, kind: input, shape index: {}]   ;;  %s1105_s7 = inlined_call_operand.vmem [shape: f32[1,16], index: 7, kind: input, shape index: {}]   ;;  %s1106_s8 = inlined_call_operand.vmem [shape: bf16[8,16], index: 8, kind: input, shape index: {}]   ;;  %s1107_s9 = inlined_call_operand.vmem [shape: f32[16,16], index: 9, kind: input, shape index: {}]   ;;  %s1108_s10 = inlined_call_operand.vmem [shape: f32[16,2], index: 10, kind: input, shape index: {}]   ;;  %s1109_s11 = inlined_call_operand.vmem [shape: f32[16,2], index: 11, kind: input, shape index: {}]   ;;  %s1110_s12 = inlined_call_operand.vmem [shape: f32[1,16], index: 12, kind: input, shape index: {}]   ;;  %s1111_s13 = inlined_call_operand.vmem [shape: bf16[4,8], index: 13, kind: input, shape index: {}]   ;;  %s1112_s14 = inlined_call_operand.vmem [shape: f32[16,16], index: 14, kind: input, shape index: {}]   ;;  %s1113_s15 = inlined_call_operand.vmem [shape: f32[16,2], index: 15, kind: input, shape index: {}]   ;;  %s1114_s16 = inlined_call_operand.vmem [shape: f32[16,2], index: 16, kind: input, shape index: {}]   ;;  %s1115_s17 = inlined_call_operand.vmem [shape: f32[1,16], index: 17, kind: input, shape index: {}]   ;;  %s1116_s18 = inlined_call_operand.hbm [shape: f32[4,8], index: 18, kind: output, shape index: {}]  }
   0x1   :  { %1119 = sst [smem:[#allocation6_spill]] %s1098_s0 }
   0x2   :  { %1120 = sst [smem:[#allocation7_spill]] %s1099_s1 }
   0x3   :  { %1121 = sst [smem:[#allocation8_spill]] %s1100_s2 }
   0x4   :  { %s1122_s29 = sld [smem:[#allocation7_spill]] }
   0xa   :  { %v65_v0 = vld [vmem:[%s1122_s29 + $0x18] sm:$0xff]  ;;  %v64_v1 = vld [vmem:[%s1122_s29 + $0x10] sm:$0xff]  ;;  %v63_v2 = vld [vmem:[%s1122_s29 + $0x8] sm:$0xff] }
   0xb   :  { %85 = vmatpush.msra.mxu0 %v65_v0 }
   0xd   :  { %86 = vmatpush.msra.mxu0 %v64_v1 }
   0xe   :  { %23 = vsyncpa [#allocation4], 0  ;;  %v62_v3 = vld [vmem:[%s1122_s29] sm:$0xff]  ;;  %s1123_s23 = sld [smem:[#allocation6_spill]]  ;;  %vm66_vm0 = vcmask 261120   ;;  %vm102_vm1 = vcmask 64512  }
   0xf   :  { %87 = vmatpush.msra.mxu0 %v63_v2  ;;  %s1124_s28 = sld [smem:[#allocation8_spill]]  ;;  %v133_v9 = vld [vmem:[%s1102_s4 + $0x8] sm:$0xff]  ;;  %v132_v10 = vld [vmem:[%s1102_s4] sm:$0xff]  ;;  %vm139_vm2 = vcmask 130048   ;;  %v839_v25 = vmov 16.0   ;;  %s843_s25 = smov 120  }
  0x10   :  { %160 = vmatpush.msra.mxu2 %v133_v9  ;;  %v97_v11 = vld [vmem:[%s1101_s3] sm:$0x1]  ;;  %v237_v18 = vld [vmem:[%s1107_s9 + $0x8] sm:$0xff]  ;;  %791 = vrcp.f32 %v839_v25  ;;  %s844_s26 = smov [#allocation3]  }
  0x11   :  { %88 = vmatpush.msra.mxu0 %v62_v3  ;;  %v98_v12 = vmul.f32 24.0, %v97_v11  ;;  %v236_v19 = vld [vmem:[%s1107_s9] sm:$0xff]  ;;  %263 = vmatpush.msra.mxu3 %v237_v18  ;;  %v239_v61 = vld [vmem:[%s1108_s10 + $0x8] sm:$0xff]  ;;  %s745_s27 = sshll.u32 %s844_s26, 4  ;;  %s746_s27 = int_to_ptr.vmem [resolvable:$true] %s745_s27 }
  0x12   :  { %161 = vmatpush.msra.mxu2 %v132_v10  ;;  %v134_v20 = vld [vmem:[%s1103_s5] sm:$0x1]  ;;  %v241_v63 = vld [vmem:[%s1109_s11 + $0x8] sm:$0xff] }
  0x13   :  { %v100_v13 = vperm.slane %v98_v12, 0  ;;  %264 = vmatpush.msra.mxu3 %v236_v19  ;;  %v135_v21 = vmul.f32 4.0, %v134_v20  ;;  %v238_v62 = vld [vmem:[%s1108_s10] sm:$0xff]  ;;  %v840_v20 = vmov 0.0   ;;  %s747_s10 = sshll.u32 %s1116_s18, 4  ;;  %s748_s10 = int_to_ptr.hbm [resolvable:$true] %s747_s10 }
  0x14   :  { %v60_v4 = vld [vmem:[%s1123_s23] sm:$0xff]  ;;  %v61_v5 = vld [vmem:[%s1123_s23 + $0x8] sm:$0xff]  ;;  %315 = vmatpush.msrb.mxu2 %v241_v63 }
  0x15   :  { %756 = vmatmul.msk.f32.vlgmr.msra.gmra.mxu0 %vm66_vm0, %v60_v4  ;;  %v96_v6 = vld [vmem:[%s1124_s28] sm:$0xff]  ;;  %v137_v22 = vperm.slane %v135_v21, 0 }
  0x16   :  { %124 = vmatpush.msra.mxu1 %v96_v6  ;;  %v792_v28 = vpop.eup %791  ;;  %v787_v6 = vld [vmem:[%s1104_s6] ss:$0 sm:$0xff] }
  0x17   :  { %v189_v29 = vmul.f32 16.0, %v792_v28  ;;  %vm193_vm3 = vweird.f32 %v792_v28  ;;  %v788_v9 = vld [vmem:[%s1105_s7] ss:$0 sm:$0xff] }
  0x18   :  { %292 = vmatpush.msrb.mxu1 %v239_v61 }
  0x19   :  { %v190_v34 = vsub.f32 1.0, %v189_v29 }
  0x1a   :  { %293 = vmatpush.msrb.mxu1 %v238_v62 }
  0x1b   :  { %v191_v37 = vmul.f32 %v792_v28, %v190_v34 }
  0x1d   :  { %757 = vmatmul.msk.f32.gmra.mxu0 %vm66_vm0, %v61_v5  ;;  %v192_v40 = vadd.f32 %v792_v28, %v191_v37 }
  0x1f   :  { %v194_v43 = vsel %vm193_vm3, %v792_v28, %v192_v40 }
  0x92   :  { %v90_v7 = vpop.f32.mrf.mxu0 }
  0x93   :  { %758 = vmatmul.msk.f32.vlgmr.msra.gmra.mxu1 %vm102_vm1, %v90_v7 }
  0x9a   :  { %v93_v8 = vpop.f32.mrf.mxu0 }
  0x9b   :  { %759 = vmatmul.msk.f32.gmra.mxu1 %vm102_vm1, %v93_v8 }
 0x110   :  { %v126_v14 = vpop.f32.mrf.mxu1 }
 0x111   :  { %v127_v15 = vadd.f32 %v126_v14, %v100_v13 }
 0x113   :  { %760 = vmatmul.msk.f32.vlgmr.msra.gmra.mxu2 %vm139_vm2, %v127_v15  ;;  %v240_v15 = vld [vmem:[%s1109_s11] sm:$0xff] }
 0x114   :  { %316 = vmatpush.msrb.mxu2 %v240_v15 }
 0x118   :  { %v129_v16 = vpop.f32.mrf.mxu1 }
 0x119   :  { %v130_v17 = vadd.f32 %v129_v16, %v100_v13  ;;  %v355_v16 = vlaneseq }
 0x11b   :  { %761 = vmatmul.msk.f32.gmra.mxu2 %vm139_vm2, %v130_v17  ;;  %v356_v17 = vand.u32 127, %v355_v16 }
 0x11d   :  { %vm401_vm7 = vcmp.ge.s32.totalorder %v356_v17, 8  ;;  %vm402_vm8 = vcmp.lt.s32.totalorder %v356_v17, 16  ;;  %vm358_vm10 = vcmp.lt.s32.totalorder %v356_v17, 8 }
 0x11e   :  { %vm403_vm9 = vmand %vm401_vm7, %vm402_vm8 }
 0x11f   :  { %v1011_v21 = vsel %vm403_vm9, 1.0, %v840_v20 }
 0x196   :  { %v163_v23 = vpop.f32.mrf.mxu2 }
 0x197   :  { %v164_v24 = vadd.f32 %v163_v23, %v137_v22 }
 0x199   :  { %171 = vst.msk [vmem:[#allocation2] sm:$0xff] %vm139_vm2, %v164_v24 }
 0x19e   :  { %v166_v26 = vpop.f32.mrf.mxu2 }
 0x19f   :  { %v167_v27 = vadd.f32 %v166_v26, %v137_v22  ;;  %v1013_v22 = vsel %vm358_vm10, 1.0, %v840_v20 }
 0x1a0   :  { %v177_v30 = vld [vmem:[#allocation2] sm:$0xff] }
 0x1a1   :  { %172 = vst.msk [vmem:[#allocation2 + $0x8] sm:$0xff] %vm139_vm2, %v167_v27  ;;  %v179_v32 = vsel %vm139_vm2, %v177_v30, 0.0  ;;  %v841_v27 = vmov 1  }
 0x1a2   :  { %783 = vset.pattern.permute.xlu0 %v841_v27  ;;  %785 = vset.pattern.permute.xlu2 %v841_v27 }
 0x1a8   :  { %v178_v31 = vld [vmem:[#allocation2 + $0x8] sm:$0xff] }
 0x1a9   :  { %v180_v33 = vsel %vm139_vm2, %v178_v31, 0.0 }
 0x1aa   :  { %v181_v35 = vadd.f32 %v180_v33, %v179_v32  ;;  %v235_v33 = vld [vmem:[%s1106_s8] sm:$0xf] }
 0x1ab   :  { %v353_v37 = vunpack.c.l.bf16 %v235_v33 }
 0x1ac   :  { %v182_v36 = vrot.slane %v181_v35, 4 }
 0x1ad   :  { %vm1025_vm11 = vcmp.gt.f32.partialorder %v353_v37, 0.0 }
 0x1ae   :  { %v183_v38 = vadd.f32 %v182_v36, %v181_v35 }
 0x1b0   :  { %v184_v39 = vrot.slane %v183_v38, 2 }
 0x1b2   :  { %v185_v41 = vadd.f32 %v184_v39, %v183_v38 }
 0x1b4   :  { %v186_v42 = vrot.slane %v185_v41, 1 }
 0x1b6   :  { %v187_v44 = vadd.f32 %v186_v42, %v185_v41  ;;  %v502_v41 = vld [vmem:[%s1113_s15] sm:$0xff] }
 0x1b8   :  { %v195_v45 = vmul.f32 %v194_v43, %v187_v44 }
 0x1ba   :  { %v196_v46 = vsub.f32 %v177_v30, %v195_v45  ;;  %v197_v47 = vsub.f32 %v178_v31, %v195_v45  ;;  %v842_v31 = vmov 0  }
 0x1bc   :  { %v198_v48 = vmul.f32 %v196_v46, %v196_v46  ;;  %v199_v49 = vmul.f32 %v197_v47, %v197_v47 }
 0x1be   :  { %v200_v50 = vsel %vm139_vm2, %v198_v48, 0.0  ;;  %v201_v51 = vsel %vm139_vm2, %v199_v49, 0.0 }
 0x1bf   :  { %v202_v52 = vadd.f32 %v201_v51, %v200_v50 }
 0x1c1   :  { %v203_v53 = vrot.slane %v202_v52, 4 }
 0x1c3   :  { %v204_v54 = vadd.f32 %v203_v53, %v202_v52 }
 0x1c5   :  { %v205_v55 = vrot.slane %v204_v54, 2 }
 0x1c7   :  { %v206_v56 = vadd.f32 %v205_v55, %v204_v54 }
 0x1c9   :  { %v207_v57 = vrot.slane %v206_v56, 1 }
 0x1cb   :  { %v208_v58 = vadd.f32 %v207_v57, %v206_v56 }
 0x1cd   :  { %v209_v59 = vmul.f32 %v208_v58, %v194_v43 }
 0x1cf   :  { %v210_v60 = vadd.f32 1e-05, %v209_v59 }
 0x1d1   :  { %793 = vrsqrt.f32 %v210_v60  ;;  %vm217_vm5 = vweird.f32 %v210_v60 }
 0x1d7   :  { %v794_v0 = vpop.eup %793 }
 0x1d8   :  { %v212_v1 = vmul.f32 %v794_v0, %v210_v60  ;;  %vm218_vm4 = vweird.f32 %v794_v0 }
 0x1d9   :  { %vm219_vm6 = vmor %vm217_vm5, %vm218_vm4 }
 0x1da   :  { %v213_v2 = vmul.f32 %v794_v0, %v212_v1 }
 0x1dc   :  { %v214_v3 = vmul.f32 0.5, %v213_v2 }
 0x1de   :  { %v215_v4 = vsub.f32 1.5, %v214_v3 }
 0x1e0   :  { %v216_v5 = vmul.f32 %v794_v0, %v215_v4 }
 0x1e2   :  { %v220_v7 = vsel %vm219_vm6, %v794_v0, %v216_v5 }
 0x1e3   :  { %v221_v8 = vmul.f32 %v220_v7, %v196_v46  ;;  %v222_v12 = vmul.f32 %v220_v7, %v197_v47 }
 0x1e5   :  { %v227_v10 = vmul.f32 %v787_v6, %v221_v8  ;;  %v228_v13 = vmul.f32 %v787_v6, %v222_v12 }
 0x1e7   :  { %v233_v11 = vadd.f32 %v788_v9, %v227_v10  ;;  %v234_v14 = vadd.f32 %v788_v9, %v228_v13 }
 0x1e9   :  { %762 = vmatmul.msk.f32.vlgmr.msra.gmra.mxu3 %vm139_vm2, %v233_v11 }
 0x1f1   :  { %763 = vmatmul.msk.f32.gmra.mxu3 %vm139_vm2, %v234_v14 }
 0x26c   :  { %v266_v18 = vpop.f32.mrf.mxu3 }
 0x26d   :  { %764 = vmatmul.msk.f32.vlgmr.msrb.gmra.mxu1 %vm139_vm2, %v266_v18  ;;  %766 = vmatmul.msk.f32.vlgmr.msrb.gmra.mxu2 %vm139_vm2, %v266_v18  ;;  %v442_v25 = vmul.f32 %v1011_v21, %v266_v18  ;;  %v399_v26 = vmul.f32 %v1013_v22, %v266_v18 }
 0x274   :  { %v269_v19 = vpop.f32.mrf.mxu3 }
 0x275   :  { %765 = vmatmul.msk.f32.gmra.mxu1 %vm139_vm2, %v269_v19  ;;  %v443_v23 = vmul.f32 %v1011_v21, %v269_v19  ;;  %v400_v24 = vmul.f32 %v1013_v22, %v269_v19 }
 0x277   :  { %461 = vmatpush.msrb.mxu3 %v443_v23  ;;  %484 = vmatpush.msrb.mxu0 %v400_v24 }
 0x279   :  { %462 = vmatpush.msrb.mxu3 %v442_v25  ;;  %485 = vmatpush.msrb.mxu0 %v399_v26  ;;  %v501_v26 = vld [vmem:[%s1112_s14 + $0x8] sm:$0xff] }
 0x27a   :  { %524 = vmatpush.msra.mxu2 %v501_v26 }
 0x2ea   :  { %v295_v28 = vpop.f32.mrf.mxu1 }
 0x2eb   :  { %321 = vxpose.xlu1.b32.start [1/2] (short) (narrow) %v295_v28, 8  ;;  %v500_v28 = vld [vmem:[%s1112_s14] sm:$0xff] }
 0x2ec   :  { %525 = vmatpush.msra.mxu2 %v500_v28 }
 0x2f0   :  { %v318_v29 = vpop.f32.mrf.mxu2 }
 0x2f1   :  { %407 = vperm.xlu0 %783, %v318_v29  }
 0x2f2   :  { %v298_v30 = vpop.f32.mrf.mxu1 }
 0x2f3   :  { %322 = vxpose.xlu1.b32.end [2/2] (short) (narrow) %v298_v30, 8  ;;  %v504_v30 = vld [vmem:[%s1114_s16] sm:$0xff] }
 0x2f9   :  { %784 = vset.pattern.permute.xlu0 %v842_v31  ;;  %v503_v31 = vld [vmem:[%s1113_s15 + $0x8] sm:$0xff] }
 0x2fa   :  { %364 = vperm.xlu0 %784, %v318_v29   ;;  %v505_v29 = vld [vmem:[%s1114_s16 + $0x8] sm:$0xff]  ;;  %547 = vmatpush.msra.mxu3 %v503_v31 }
 0x2fb   :  { %567 = vmatpush.msra.mxu0 %v505_v29 }
 0x2fc   :  { %548 = vmatpush.msra.mxu3 %v502_v41 }
 0x2fd   :  { %568 = vmatpush.msra.mxu0 %v504_v30 }
 0x363   :  { %v408_v32 = vpop.permute.xlu0 %407 }
 0x36c   :  { %v365_v38 = vpop.permute.xlu0 %364 }
 0x38f   :  { %v337_v34 = vpop.trf.xlu1 }
 0x390   :  { %v367_v35 = vperm.slane %v337_v34, 0  ;;  %v410_v36 = vperm.slane %v337_v34, 1 }
 0x392   :  { %v368_v39 = vadd.f32 %v367_v35, %v365_v38  ;;  %v411_v40 = vadd.f32 %v410_v36, %v408_v32  ;;  %v789_v32 = vld [vmem:[%s1110_s12] ss:$0 sm:$0xff] }
 0x394   :  { %vm412_vm12 = vcmp.gt.f32.partialorder %v411_v40, 0.0  ;;  %v413_v42 = vmul.f32 0.2, %v411_v40  ;;  %v370_v44 = vmul.f32 0.2, %v368_v39  ;;  %vm369_vm13 = vcmp.gt.f32.partialorder %v368_v39, 0.0 }
 0x396   :  { %v414_v43 = vsel %vm412_vm12, %v411_v40, %v413_v42  ;;  %v371_v47 = vsel %vm369_vm13, %v368_v39, %v370_v44 }
 0x397   :  { %v415_v45 = vsel %vm1025_vm11, %v414_v43, -1e+30  ;;  %v372_v48 = vsel %vm1025_vm11, %v371_v47, -1e+30 }
 0x398   :  { %v416_v46 = vsel %vm139_vm2, %v415_v45, -inf  ;;  %v373_v49 = vsel %vm139_vm2, %v372_v48, -inf }
 0x399   :  { %417 = vmax.xlane.f32.xlu2 %v416_v46 }
 0x3a1   :  { %374 = vmax.xlane.f32.xlu2 %v373_v49 }
 0x40c   :  { %v418_v50 = vpop.xlane.xlu2 %417 }
 0x40d   :  { %v419_v51 = vsub.f32 %v415_v45, %v418_v50 }
 0x40f   :  { %v420_v52 = vmul.f32 1.442695, %v419_v51 }
 0x411   :  { %795 = vpow2.f32 %v420_v52 }
 0x414   :  { %v375_v53 = vpop.xlane.xlu2 %374 }
 0x415   :  { %v376_v54 = vsub.f32 %v372_v48, %v375_v53 }
 0x417   :  { %v796_v55 = vpop.eup %795  ;;  %v377_v56 = vmul.f32 1.442695, %v376_v54 }
 0x418   :  { %v422_v57 = vsel %vm1025_vm11, %v796_v55, 0.0 }
 0x419   :  { %797 = vpow2.f32 %v377_v56  ;;  %v423_v58 = vsel %vm139_vm2, %v422_v57, 0.0 }
 0x41a   :  { %424 = vadd.xlane.f32.xlu1 %v423_v58 }
 0x41f   :  { %v798_v59 = vpop.eup %797 }
 0x420   :  { %v379_v60 = vsel %vm1025_vm11, %v798_v59, 0.0  ;;  %vm618_vm11 = vcmask 60416  }
 0x421   :  { %v380_v61 = vsel %vm139_vm2, %v379_v60, 0.0 }
 0x422   :  { %381 = vadd.xlane.f32.xlu2 %v380_v61 }
 0x48d   :  { %v425_v62 = vpop.xlane.xlu1 %424 }
 0x48e   :  { %v426_v63 = vmax.f32 %v425_v62, 1e-30 }
 0x490   :  { %799 = vrcp.f32 %v426_v63  ;;  %v438_v5 = vand.u32 2147483648, %v426_v63  ;;  %v436_v7 = vand.u32 2147483647, %v426_v63  ;;  %vm432_vm15 = vweird.f32 %v426_v63 }
 0x492   :  { %v439_v10 = vor.u32 1.1754944e-38, %v438_v5  ;;  %vm437_vm3 = vcmp.eq.f32.partialorder %v436_v7, 8.507059e+37 }
 0x495   :  { %v382_v0 = vpop.xlane.xlu2 %381 }
 0x496   :  { %v800_v1 = vpop.eup %799  ;;  %v383_v2 = vmax.f32 %v382_v0, 1e-30 }
 0x497   :  { %v428_v3 = vmul.f32 %v800_v1, %v426_v63  ;;  %vm433_vm14 = vweird.f32 %v800_v1 }
 0x498   :  { %801 = vrcp.f32 %v383_v2  ;;  %vm434_vm0 = vmor %vm432_vm15, %vm433_vm14  ;;  %v395_v16 = vand.u32 2147483648, %v383_v2  ;;  %v393_v18 = vand.u32 2147483647, %v383_v2  ;;  %vm389_vm5 = vweird.f32 %v383_v2 }
 0x499   :  { %v429_v4 = vsub.f32 1.0, %v428_v3 }
 0x49a   :  { %v396_v20 = vor.u32 1.1754944e-38, %v395_v16  ;;  %vm394_vm7 = vcmp.eq.f32.partialorder %v393_v18, 8.507059e+37 }
 0x49b   :  { %v430_v6 = vmul.f32 %v800_v1, %v429_v4 }
 0x49d   :  { %v431_v8 = vadd.f32 %v800_v1, %v430_v6 }
 0x49e   :  { %v802_v9 = vpop.eup %801 }
 0x49f   :  { %v385_v11 = vmul.f32 %v802_v9, %v383_v2  ;;  %v435_v12 = vsel %vm434_vm0, %v800_v1, %v431_v8  ;;  %vm390_vm4 = vweird.f32 %v802_v9 }
 0x4a0   :  { %v440_v13 = vsel %vm437_vm3, %v439_v10, %v435_v12  ;;  %vm391_vm6 = vmor %vm389_vm5, %vm390_vm4 }
 0x4a1   :  { %v386_v14 = vsub.f32 1.0, %v385_v11  ;;  %v441_v15 = vmul.f32 %v440_v13, %v422_v57 }
 0x4a3   :  { %v387_v17 = vmul.f32 %v802_v9, %v386_v14  ;;  %769 = vmatmul.msk.f32.vlgmr.msrb.gmra.mxu3 %vm139_vm2, %v441_v15 }
 0x4a5   :  { %v388_v19 = vadd.f32 %v802_v9, %v387_v17 }
 0x4a7   :  { %v392_v23 = vsel %vm391_vm6, %v802_v9, %v388_v19 }
 0x4a8   :  { %v397_v24 = vsel %vm394_vm7, %v396_v20, %v392_v23 }
 0x4a9   :  { %v398_v25 = vmul.f32 %v397_v24, %v379_v60 }
 0x4ab   :  { %770 = vmatmul.msk.f32.vlgmr.msrb.gmra.mxu0 %vm139_vm2, %v398_v25 }
 0x526   :  { %v464_v33 = vpop.f32.mrf.mxu3 }
 0x528   :  { %v487_v34 = vpop.f32.mrf.mxu0 }
 0x529   :  { %v488_v35 = vadd.f32 %v487_v34, %v464_v33 }
 0x52b   :  { %v493_v36 = vadd.f32 %v789_v32, %v488_v35 }
 0x52d   :  { %v495_v37 = vmul.f32 1.442695, %v493_v36  ;;  %vm494_vm8 = vcmp.gt.f32.partialorder %v493_v36, 0.0 }
 0x52f   :  { %803 = vpow2.f32 %v495_v37 }
 0x535   :  { %v804_v38 = vpop.eup %803 }
 0x536   :  { %v771_v39 = vadd.f32 -1.0, %v804_v38 }
 0x538   :  { %v498_v40 = vsel %vm494_vm8, %v493_v36, %v771_v39  ;;  %v790_v39 = vld [vmem:[%s1115_s17] ss:$0 sm:$0xff] }
 0x539   :  { %772 = vmatmul.msk.f32.vlgmr.msra.gmra.mxu2 %vm139_vm2, %v498_v40 }
 0x5bc   :  { %v527_v42 = vpop.f32.mrf.mxu2 }
 0x5bd   :  { %v645_v43 = vmul.f32 %v1013_v22, %v527_v42  ;;  %v682_v44 = vmul.f32 %v1011_v21, %v527_v42  ;;  %773 = vmatmul.msk.f32.vlgmr.msra.gmra.mxu3 %vm139_vm2, %v527_v42  ;;  %774 = vmatmul.msk.f32.vlgmr.msra.gmra.mxu0 %vm139_vm2, %v527_v42  ;;  %v499_v22 = vld [vmem:[%s1111_s13] sm:$0x3] }
 0x5be   :  { %v605_v21 = vunpack.c.l.bf16 %v499_v22 }
 0x5bf   :  { %701 = vmatpush.msra.mxu1 %v682_v44  ;;  %724 = vmatpush.msrb.mxu2 %v645_v43 }
 0x5c0   :  { %vm1073_vm2 = vcmp.gt.f32.partialorder %v605_v21, 0.0 }
 0x63a   :  { %v570_v45 = vpop.f32.mrf.mxu0 }
 0x63b   :  { %647 = vperm.xlu2 %785, %v570_v45   ;;  %609 = vperm.xlu0 %784, %v570_v45  }
 0x640   :  { %v550_v46 = vpop.f32.mrf.mxu3 }
 0x65d   :  { %573 = vxpose.xlu0.b32.start.end [1/1] (short) (narrow) %v550_v46, 8 }
 0x695   :  { %v648_v51 = vpop.permute.xlu2 %647 }
 0x6ad   :  { %v610_v47 = vpop.permute.xlu0 %609 }
 0x6c4   :  { %786 = vset.pattern.permute.xlu0 %v841_v27 }
 0x701   :  { %v589_v48 = vpop.trf.xlu0 }
 0x702   :  { %v612_v49 = vperm.slane %v589_v48, 0  ;;  %v650_v50 = vperm.slane %v589_v48, 1 }
 0x704   :  { %v613_v52 = vadd.f32 %v612_v49, %v610_v47  ;;  %v651_v53 = vadd.f32 %v650_v50, %v648_v51 }
 0x706   :  { %vm652_vm9 = vcmp.gt.f32.partialorder %v651_v53, 0.0  ;;  %v653_v55 = vmul.f32 0.2, %v651_v53  ;;  %vm614_vm10 = vcmp.gt.f32.partialorder %v613_v52, 0.0  ;;  %v615_v27 = vmul.f32 0.2, %v613_v52 }
 0x708   :  { %v654_v56 = vsel %vm652_vm9, %v651_v53, %v653_v55  ;;  %v616_v57 = vsel %vm614_vm10, %v613_v52, %v615_v27 }
 0x709   :  { %v655_v58 = vsel %vm1073_vm2, %v654_v56, -1e+30  ;;  %v617_v59 = vsel %vm1073_vm2, %v616_v57, -1e+30 }
 0x70a   :  { %v656_v60 = vsel %vm618_vm11, %v655_v58, -inf  ;;  %v619_v61 = vsel %vm618_vm11, %v617_v59, -inf }
 0x70b   :  { %657 = vmax.xlane.f32.xlu0 %v656_v60  ;;  %620 = vmax.xlane.f32.xlu2 %v619_v61 }
 0x77e   :  { %v658_v62 = vpop.xlane.xlu0 %657  ;;  %v621_v63 = vpop.xlane.xlu2 %620 }
 0x77f   :  { %v622_v0 = vsub.f32 %v617_v59, %v621_v63  ;;  %v659_v1 = vsub.f32 %v655_v58, %v658_v62 }
 0x781   :  { %v623_v2 = vmul.f32 1.442695, %v622_v0  ;;  %v660_v3 = vmul.f32 1.442695, %v659_v1 }
 0x783   :  { %805 = vpow2.f32 %v623_v2 }
 0x784   :  { %807 = vpow2.f32 %v660_v3 }
 0x789   :  { %v806_v4 = vpop.eup %805 }
 0x78a   :  { %v625_v5 = vsel %vm1073_vm2, %v806_v4, 0.0  ;;  %v808_v7 = vpop.eup %807 }
 0x78b   :  { %v626_v6 = vsel %vm618_vm11, %v625_v5, 0.0  ;;  %v662_v8 = vsel %vm1073_vm2, %v808_v7, 0.0 }
 0x78c   :  { %627 = vadd.xlane.f32.xlu2 %v626_v6  ;;  %v663_v9 = vsel %vm618_vm11, %v662_v8, 0.0 }
 0x794   :  { %664 = vadd.xlane.f32.xlu2 %v663_v9 }
 0x7ff   :  { %v628_v10 = vpop.xlane.xlu2 %627 }
 0x800   :  { %v629_v11 = vmax.f32 %v628_v10, 1e-30 }
 0x802   :  { %809 = vrcp.f32 %v629_v11  ;;  %v641_v17 = vand.u32 2147483648, %v629_v11  ;;  %v639_v19 = vand.u32 2147483647, %v629_v11  ;;  %vm635_vm13 = vweird.f32 %v629_v11 }
 0x804   :  { %v642_v24 = vor.u32 1.1754944e-38, %v641_v17  ;;  %vm640_vm15 = vcmp.eq.f32.partialorder %v639_v19, 8.507059e+37 }
 0x807   :  { %v665_v12 = vpop.xlane.xlu2 %664 }
 0x808   :  { %v810_v13 = vpop.eup %809  ;;  %v666_v14 = vmax.f32 %v665_v12, 1e-30 }
 0x809   :  { %v631_v15 = vmul.f32 %v810_v13, %v629_v11  ;;  %vm636_vm12 = vweird.f32 %v810_v13 }
 0x80a   :  { %811 = vrcp.f32 %v666_v14  ;;  %vm637_vm14 = vmor %vm635_vm13, %vm636_vm12  ;;  %v678_v31 = vand.u32 2147483648, %v666_v14  ;;  %v676_v33 = vand.u32 2147483647, %v666_v14  ;;  %vm672_vm3 = vweird.f32 %v666_v14 }
 0x80b   :  { %v632_v16 = vsub.f32 1.0, %v631_v15 }
 0x80c   :  { %v679_v35 = vor.u32 1.1754944e-38, %v678_v31  ;;  %vm677_vm5 = vcmp.eq.f32.partialorder %v676_v33, 8.507059e+37 }
 0x80d   :  { %v633_v18 = vmul.f32 %v810_v13, %v632_v16 }
 0x80f   :  { %v634_v20 = vadd.f32 %v810_v13, %v633_v18 }
 0x810   :  { %v812_v23 = vpop.eup %811 }
 0x811   :  { %v668_v25 = vmul.f32 %v812_v23, %v666_v14  ;;  %v638_v26 = vsel %vm637_vm14, %v810_v13, %v634_v20  ;;  %vm673_vm0 = vweird.f32 %v812_v23 }
 0x812   :  { %v643_v28 = vsel %vm640_vm15, %v642_v24, %v638_v26  ;;  %vm674_vm4 = vmor %vm672_vm3, %vm673_vm0 }
 0x813   :  { %v669_v29 = vsub.f32 1.0, %v668_v25  ;;  %v644_v30 = vmul.f32 %v643_v28, %v625_v5 }
 0x815   :  { %v670_v32 = vmul.f32 %v812_v23, %v669_v29  ;;  %776 = vmatmul.msk.f32.vlgmr.msrb.gmra.mxu2 %vm102_vm1, %v644_v30 }
 0x817   :  { %v671_v34 = vadd.f32 %v812_v23, %v670_v32 }
 0x819   :  { %v675_v36 = vsel %vm674_vm4, %v812_v23, %v671_v34 }
 0x81a   :  { %v680_v37 = vsel %vm677_vm5, %v679_v35, %v675_v36 }
 0x81b   :  { %v681_v38 = vmul.f32 %v680_v37, %v662_v8 }
 0x81d   :  { %775 = vmatmul.msk.f32.vlgmr.msra.gmra.mxu1 %vm102_vm1, %v681_v38 }
 0x898   :  { %v726_v40 = vpop.f32.mrf.mxu2 }
 0x89a   :  { %v703_v41 = vpop.f32.mrf.mxu1 }
 0x89b   :  { %v727_v42 = vadd.f32 %v726_v40, %v703_v41 }
 0x89d   :  { %v732_v43 = vadd.f32 %v790_v39, %v727_v42 }
 0x89f   :  { %734 = vrot.lane.b32.xlu2 %v732_v43, %s843_s25 }
 0x8f9   :  { %v735_v44 = vpop.permute.xlu2 %734 }
 0x8fa   :  { %v737_v45 = vadd.f32 %v735_v44, %v732_v43 }
 0x8fc   :  { %v738_v46 = vmul.f32 0.5, %v737_v45 }
 0x8fe   :  { %739 = vst.msk [vmem:[#allocation3] sm:$0xf] %vm618_vm11, %v738_v46 }
 0x8ff   :  { %750 = dma.vmem_to_hbm [thread:$0]  %s746_s27, 64, %s748_s10, [#allocation4]  }
 0x900   :  { %837 = dma.done.wait [#allocation4], 64  }
 0x901   :  { %838 = vsyncadd [#allocation4], 4294967232 }
 0x902   :  { %755 = vsyncpa [#allocation4], 1 }

</bundles_post_ra>
